<compile_context>
chip_gen: v6e
topology: v6e:2x2x1
jax: 0.10.0
libtpu: 0.0.40
codegen_flags: <defaults>
</compile_context>

<pallas_src>
import numpy as np

import jax
import jax.numpy as jnp
from jax.experimental import pallas as pl
from jax.experimental.pallas import tpu as pltpu


def _make_word_dropout_kernel(dropout_rate: float, drop_to_token: int, lanes: int):
    # Integer threshold: P(u32 bits < thr) == dropout_rate for iid uniform bits.
    thr = int(round(float(dropout_rate) * float(1 << 32)))
    thr = max(0, min(thr, (1 << 32) - 1))
    thr_u32 = np.uint32(thr)          # numpy scalar -> jaxpr literal
    tok = int(drop_to_token)          # python int  -> jaxpr literal

    GOLDEN = np.uint32(0x9E3779B9)    # splitmix / lowbias32 mixing constants
    M1 = np.uint32(0x7FEB352D)
    M2 = np.uint32(0x846CA68B)

    def kernel(seed_ref, x_ref, o_ref):
        block_rows = x_ref.shape[0]
        # Global element index inside the padded 2-D view (per-tile unique).
        base = pl.program_id(0) * block_rows                       # int32 scalar
        row = jax.lax.broadcasted_iota(jnp.int32, x_ref.shape, 0)
        col = jax.lax.broadcasted_iota(jnp.int32, x_ref.shape, 1)
        gidx = ((base + row) * lanes + col).astype(jnp.uint32)

        seed = seed_ref[0].astype(jnp.uint32)
        # Counter-based hash (lowbias32): pure VPU int ops, lowers everywhere.
        z = gidx + seed * GOLDEN
        z = (z ^ (z >> 16)) * M1
        z = (z ^ (z >> 15)) * M2
        z = z ^ (z >> 16)

        drop = z < thr_u32
        o_ref[...] = jnp.where(drop, tok, x_ref[...]).astype(o_ref.dtype)

    return kernel


def word_dropout(word_idx, seed, *, dropout_rate, drop_to_token, training=True):
    """Pallas implementation of fastNLP WordDropout.forward.

    word_idx: integer array (any shape; typically (batch, seq) int32).
    seed:     int seeding the in-kernel counter-based PRNG.  Vary per step.
    """
    if not training or dropout_rate <= 0.0:
        return word_idx
    if dropout_rate >= 1.0:
        # Exact semantics for rate >= 1 (integer threshold would give 1 - 2^-32).
        return jnp.full_like(word_idx, drop_to_token)

    orig_shape = word_idx.shape
    dtype = word_idx.dtype
    itemsize = jnp.dtype(dtype).itemsize
    total = int(np.prod(orig_shape)) if len(orig_shape) else 1

    # Lane-dense 2-D view; pad the flattened array so rows is a multiple of 8
    # and the lane dim is a multiple of 128 (no masked vst.msk partial stores,
    # no single-giant-block fallback).
    lanes = 1024 if total >= 1024 else 128
    rows = -(-total // lanes)
    rows = ((rows + 7) // 8) * 8
    padded_total = rows * lanes

    flat = word_idx.reshape(-1)
    if padded_total != total:
        flat = jnp.pad(flat, (0, padded_total - total))
    x2d = flat.reshape(rows, lanes)

    # ~4 MiB blocks: input+output double-buffered = 4x block = ~16 MiB pipeline
    # footprint, safely under the 32 MiB scoped-VMEM limit on every generation.
    target_bytes = 4 * 1024 * 1024
    block_rows = max(8, (target_bytes // (lanes * itemsize)) // 8 * 8)
    block_rows = min(block_rows, rows)
    # Guarantee >= 2 grid steps when there is enough work so both v7x
    # TensorCores get a share under dimension_semantics=("parallel",).
    if rows >= 16:
        half = max(8, ((rows // 2) // 8) * 8)
        block_rows = min(block_rows, half)
    grid = (-(-rows // block_rows),)   # partial last block handled by Pallas

    kernel = _make_word_dropout_kernel(float(dropout_rate), int(drop_to_token), lanes)
    seed_arr = jnp.asarray([seed], dtype=jnp.int32)

    out2d = pl.pallas_call(
        kernel,
        out_shape=jax.ShapeDtypeStruct((rows, lanes), dtype),
        grid_spec=pltpu.PrefetchScalarGridSpec(
            num_scalar_prefetch=1,        # seed lands in SMEM, passed first
            grid=grid,
            in_specs=[
                pl.BlockSpec((block_rows, lanes), lambda i, seed_ref: (i, 0)),
            ],
            out_specs=pl.BlockSpec((block_rows, lanes), lambda i, seed_ref: (i, 0)),
        ),
        compiler_params=pltpu.CompilerParams(
            dimension_semantics=("parallel",),
            vmem_limit_bytes=32 * 1024 * 1024,
        ),
        cost_estimate=pl.CostEstimate(
            flops=10 * padded_total,
            transcendentals=0,
            bytes_accessed=2 * padded_total * itemsize,
        ),
        # Output may reuse word_idx's HBM buffer (index 1 = x2d; 0 is the seed).
        input_output_aliases={1: 0},
    )(seed_arr, x2d)

    return out2d.reshape(-1)[:total].reshape(orig_shape)


if __name__ == "__main__":
    key = jax.random.PRNGKey(0)
    B, S = 8, 128
    VOCAB = 1000
    DROPOUT_RATE = 0.3
    DROP_TO_TOKEN = 1  # e.g. <unk> token id

    word_idx = jax.random.randint(key, (B, S), minval=2, maxval=VOCAB, dtype=jnp.int32)

    # Eval mode is identity.
    out_eval = word_dropout(
        word_idx, seed=1234,
        dropout_rate=DROPOUT_RATE, drop_to_token=DROP_TO_TOKEN, training=False,
    )
    assert bool(jnp.all(out_eval == word_idx))

    out = word_dropout(
        word_idx, seed=1234,
        dropout_rate=DROPOUT_RATE, drop_to_token=DROP_TO_TOKEN, training=True,
    )
    out = jax.block_until_ready(out)

    out_np = np.asarray(out)
    word_np = np.asarray(word_idx)
    is_orig = out_np == word_np
    is_drop = out_np == DROP_TO_TOKEN
    assert bool(np.all(is_orig | is_drop))
    emp_rate = float(np.mean(is_drop.astype(np.float32)))
    assert abs(emp_rate - DROPOUT_RATE) < 0.1, f"empirical drop rate {emp_rate}"

    # Ragged (non-128-friendly) shape exercises the lane-dense padding path.
    word_idx2 = jax.random.randint(
        jax.random.PRNGKey(1), (3, 50), minval=2, maxval=VOCAB, dtype=jnp.int32)
    out2 = jax.block_until_ready(word_dropout(
        word_idx2, seed=7,
        dropout_rate=DROPOUT_RATE, drop_to_token=DROP_TO_TOKEN, training=True,
    ))
    out2_np = np.asarray(out2)
    w2_np = np.asarray(word_idx2)
    assert out2_np.shape == w2_np.shape
    assert bool(np.all((out2_np == w2_np) | (out2_np == DROP_TO_TOKEN)))

    print("KERNEL_OK")
</pallas_src>

<mosaic_0001>
module attributes {stable_mosaic.version = 11 : i64} {
  func.func @kernel(%arg0: i32, %arg1: memref<1xi32, #tpu.memory_space<smem>>, %arg2: memref<8x1024xi32, #tpu.memory_space<vmem>>, %arg3: memref<8x1024xi32, #tpu.memory_space<vmem>>) attributes {dimension_semantics = [#tpu.dimension_semantics<parallel>], iteration_bounds = array<i64: 1>, scalar_prefetch = 1 : i64, scratch_operands = 0 : i64, tpu.core_type = #tpu.core_type<tc>, window_params = [{transform_indices = @transform_0, window_bounds = array<i64: 8, 1024>}, {transform_indices = @transform_1, window_bounds = array<i64: 8, 1024>}]} {
    %c8_i32 = arith.constant 8 : i32
    %0 = arith.muli %arg0, %c8_i32 : i32
    %1 = tpu.iota {dimensions = array<i32: 0>} : vector<8x1024xi32>
    %2 = tpu.iota {dimensions = array<i32: 1>} : vector<8x1024xi32>
    %3 = vector.broadcast %0 : i32 to vector<8x1024xi32>
    %4 = arith.addi %3, %1 : vector<8x1024xi32>
    %c1024_i32 = arith.constant 1024 : i32
    %5 = vector.broadcast %c1024_i32 : i32 to vector<8x1024xi32>
    %6 = arith.muli %4, %5 : vector<8x1024xi32>
    %7 = arith.addi %6, %2 : vector<8x1024xi32>
    %c0 = arith.constant 0 : index
    %8 = memref.load %arg1[%c0] : memref<1xi32, #tpu.memory_space<smem>>
    %c-1640531527_i32 = arith.constant -1640531527 : i32
    %9 = arith.muli %8, %c-1640531527_i32 : i32
    %10 = vector.broadcast %9 : i32 to vector<8x1024xi32>
    %11 = arith.addi %7, %10 : vector<8x1024xi32>
    %c16_i32 = arith.constant 16 : i32
    %12 = vector.broadcast %c16_i32 : i32 to vector<8x1024xi32>
    %13 = arith.shrui %11, %12 : vector<8x1024xi32>
    %14 = arith.xori %11, %13 : vector<8x1024xi32>
    %c2146121005_i32 = arith.constant 2146121005 : i32
    %15 = vector.broadcast %c2146121005_i32 : i32 to vector<8x1024xi32>
    %16 = arith.muli %14, %15 : vector<8x1024xi32>
    %c15_i32 = arith.constant 15 : i32
    %17 = vector.broadcast %c15_i32 : i32 to vector<8x1024xi32>
    %18 = arith.shrui %16, %17 : vector<8x1024xi32>
    %19 = arith.xori %16, %18 : vector<8x1024xi32>
    %c-2073254261_i32 = arith.constant -2073254261 : i32
    %20 = vector.broadcast %c-2073254261_i32 : i32 to vector<8x1024xi32>
    %21 = arith.muli %19, %20 : vector<8x1024xi32>
    %c16_i32_0 = arith.constant 16 : i32
    %22 = vector.broadcast %c16_i32_0 : i32 to vector<8x1024xi32>
    %23 = arith.shrui %21, %22 : vector<8x1024xi32>
    %24 = arith.xori %21, %23 : vector<8x1024xi32>
    %c1288490189_i32 = arith.constant 1288490189 : i32
    %25 = vector.broadcast %c1288490189_i32 : i32 to vector<8x1024xi32>
    %26 = arith.cmpi ult, %24, %25 : vector<8x1024xi32>
    %c0_1 = arith.constant 0 : index
    %c0_2 = arith.constant 0 : index
    %27 = vector.load %arg2[%c0_1, %c0_2] : memref<8x1024xi32, #tpu.memory_space<vmem>>, vector<8x1024xi32>
    %c1_i32 = arith.constant 1 : i32
    %28 = vector.broadcast %c1_i32 : i32 to vector<8x1024xi32>
    %29 = arith.select %26, %28, %27 : vector<8x1024xi1>, vector<8x1024xi32>
    %c0_3 = arith.constant 0 : index
    %c0_4 = arith.constant 0 : index
    %30 = vector.load %arg3[%c0_3, %c0_4] : memref<8x1024xi32, #tpu.memory_space<vmem>>, vector<8x1024xi32>
    tpu.vector_store %arg3[%c0_3, %c0_4], %29 {strides = array<i32>} : memref<8x1024xi32, #tpu.memory_space<vmem>>, vector<8x1024xi32>,
    return
  }
  func.func @transform_0(%arg0: i32, %arg1: memref<1xi32, #tpu.memory_space<smem>>) -> (i32, i32) {
    %c0_i32 = arith.constant 0 : i32
    %c0_i32_0 = arith.constant 0 : i32
    return %arg0, %c0_i32 : i32, i32
  }
  func.func @transform_1(%arg0: i32, %arg1: memref<1xi32, #tpu.memory_space<smem>>) -> (i32, i32) {
    %c0_i32 = arith.constant 0 : i32
    %c0_i32_0 = arith.constant 0 : i32
    return %arg0, %c0_i32 : i32, i32
  }
}

</mosaic_0001>

<bundles_post_ra>
// kernel: tpu_custom_call.1
= control target key start
LH: loop header
LB: loop body
LE: loop exit
PB: predicated region body
PF: predicated region fallthrough
CT: control target
= control target key end

     0   :  { %8 = vsyncpa [#allocation5], 0  ;;  %s240_s0 = inlined_call_operand.<no memory space> [shape: s32[1], index: 0, kind: input, shape index: {}]   ;;  %s241_s1 = inlined_call_operand.hbm [shape: s32[8,1024], index: 1, kind: input, shape index: {}, may-alias: {1,2}]   ;;  %s242_s2 = inlined_call_operand.hbm [shape: s32[8,1024], index: 2, kind: output, shape index: {}, may-alias: {1,2}]  }
   0x1   :  { %9 = vsyncpa [#allocation6], 0  ;;  %s214_s9 = smov [#allocation4]  }
   0x2   :  { %s16_s10 = sshll.u32 %s214_s9, 4  ;;  %s17_s10 = int_to_ptr.vmem [resolvable:$true] %s16_s10 }
   0x3   :  { %s178_s11 = scalar_lea.vmem %s17_s10, 1024  ;;  %p183_p1 = scmp.lt.s32.totalorder %s17_s10, %s17_s10 }
   0x4   :  { %p179_p0 = scmp.ne.s32.totalorder %s17_s10, %s178_s11  ;;  %p184_p2 = scmp.lt.s32.totalorder %s178_s11, %s178_s11 }
   0x6   :  { %p185_p3 = por %p184_p2, %p183_p1 }
   0x8   :  { %p186_p4 = pnand %p185_p3, %p179_p0 }
   0xa   :  { %189 = shalt.err (!%p186_p4)
}
   0xb   :  { %19 = dma.hbm_to_vmem [thread:$0]  %s241_s1, 1024, %s17_s10, [#allocation5]  }
   0xc   :  { %210 = dma.done.wait [#allocation5], 1024  }
   0xd   :  { %211 = vsyncadd [#allocation5], 4294966272  ;;  %v24_v0 = vlaneseq  ;;  %s47_s16 = smul.u32 2654435769, %s240_s0  ;;  %s215_s0 = smov [#allocation7]  }
   0xe   :  { %s159_s1 = sshll.u32 %s215_s0, 4  ;;  %s160_s1 = int_to_ptr.vmem [resolvable:$true] %s159_s1 }
   0xf   :  { %v25_v1 = vshrl.u32 %v24_v0, 7  ;;  %v27_v2 = vand.u32 127, %v24_v0  ;;  %v48_v3 = vstv %s47_s16  ;;  %s190_s17 = scalar_lea.vmem %s160_s1, 1024  ;;  %p195_p6 = scmp.lt.s32.totalorder %s160_s1, %s160_s1 }
  0x10   :  { %p191_p5 = scmp.ne.s32.totalorder %s160_s1, %s190_s17  ;;  %p196_p7 = scmp.lt.s32.totalorder %s190_s17, %s190_s17 }
  0x11   :  { %v37_v4 = vmul.u32 1024, %v25_v1  ;;  %v28_v5 = vadd.s32 128, %v27_v2  ;;  %v29_v6 = vadd.s32 256, %v27_v2  ;;  %v30_v7 = vadd.s32 384, %v27_v2 }
  0x12   :  { %v31_v8 = vadd.s32 512, %v27_v2  ;;  %v32_v9 = vadd.s32 640, %v27_v2  ;;  %v33_v10 = vadd.s32 768, %v27_v2  ;;  %v34_v11 = vadd.s32 896, %v27_v2  ;;  %p197_p8 = por %p196_p7, %p195_p6 }
  0x13   :  { %v38_v12 = vadd.s32 %v37_v4, %v27_v2  ;;  %v39_v13 = vadd.s32 %v37_v4, %v28_v5  ;;  %v40_v14 = vadd.s32 %v37_v4, %v29_v6  ;;  %v41_v15 = vadd.s32 %v37_v4, %v30_v7 }
  0x14   :  { %v42_v16 = vadd.s32 %v37_v4, %v31_v8  ;;  %v43_v17 = vadd.s32 %v37_v4, %v32_v9  ;;  %v44_v18 = vadd.s32 %v37_v4, %v33_v10  ;;  %v45_v19 = vadd.s32 %v37_v4, %v34_v11  ;;  %p198_p9 = pnand %p197_p8, %p191_p5 }
  0x15   :  { %v49_v20 = vadd.s32 %v48_v3, %v38_v12  ;;  %v50_v21 = vadd.s32 %v48_v3, %v39_v13  ;;  %v51_v22 = vadd.s32 %v48_v3, %v40_v14  ;;  %v52_v23 = vadd.s32 %v48_v3, %v41_v15 }
  0x16   :  { %v53_v24 = vadd.s32 %v48_v3, %v42_v16  ;;  %v54_v25 = vadd.s32 %v48_v3, %v43_v17  ;;  %v55_v26 = vadd.s32 %v48_v3, %v44_v18  ;;  %v56_v27 = vadd.s32 %v48_v3, %v45_v19  ;;  %v129_v17 = vld [vmem:[#allocation4] sm:$0xff]  ;;  %v130_v19 = vld [vmem:[#allocation4 + $0x8] sm:$0xff] }
  0x17   :  { %v57_v28 = vshrl.u32 %v49_v20, 16  ;;  %v58_v29 = vshrl.u32 %v50_v21, 16  ;;  %v59_v30 = vshrl.u32 %v51_v22, 16  ;;  %v60_v31 = vshrl.u32 %v52_v23, 16 }
  0x18   :  { %v61_v32 = vshrl.u32 %v53_v24, 16  ;;  %v62_v33 = vshrl.u32 %v54_v25, 16  ;;  %v63_v34 = vshrl.u32 %v55_v26, 16  ;;  %v64_v35 = vshrl.u32 %v56_v27, 16 }
  0x19   :  { %v65_v36 = vxor.u32 %v57_v28, %v49_v20  ;;  %v66_v37 = vxor.u32 %v58_v29, %v50_v21  ;;  %v67_v38 = vxor.u32 %v59_v30, %v51_v22  ;;  %v68_v39 = vxor.u32 %v60_v31, %v52_v23  ;;  %v131_v23 = vld [vmem:[#allocation4 + $0x10] sm:$0xff]  ;;  %v133_v29 = vld [vmem:[#allocation4 + $0x20] sm:$0xff]  ;;  %v134_v31 = vld [vmem:[#allocation4 + $0x28] sm:$0xff] }
  0x1a   :  { %v69_v40 = vxor.u32 %v61_v32, %v53_v24  ;;  %v70_v41 = vxor.u32 %v62_v33, %v54_v25  ;;  %v71_v42 = vxor.u32 %v63_v34, %v55_v26  ;;  %v72_v43 = vxor.u32 %v64_v35, %v56_v27  ;;  %v132_v25 = vld [vmem:[#allocation4 + $0x18] sm:$0xff] }
  0x1b   :  { %v73_v44 = vmul.u32 2146121005, %v65_v36  ;;  %v74_v45 = vmul.u32 2146121005, %v66_v37 }
  0x1c   :  { %v75_v46 = vmul.u32 2146121005, %v67_v38  ;;  %v76_v47 = vmul.u32 2146121005, %v68_v39  ;;  %v135_v39 = vld [vmem:[#allocation4 + $0x30] sm:$0xff] }
  0x1d   :  { %v81_v48 = vshrl.u32 %v73_v44, 15  ;;  %v82_v49 = vshrl.u32 %v74_v45, 15  ;;  %v77_v50 = vmul.u32 2146121005, %v69_v40  ;;  %v78_v51 = vmul.u32 2146121005, %v70_v41 }
  0x1e   :  { %v83_v52 = vshrl.u32 %v75_v46, 15  ;;  %v84_v53 = vshrl.u32 %v76_v47, 15  ;;  %v79_v54 = vmul.u32 2146121005, %v71_v42  ;;  %v80_v55 = vmul.u32 2146121005, %v72_v43 }
  0x1f   :  { %v89_v56 = vxor.u32 %v81_v48, %v73_v44  ;;  %v90_v57 = vxor.u32 %v82_v49, %v74_v45  ;;  %v85_v58 = vshrl.u32 %v77_v50, 15  ;;  %v86_v59 = vshrl.u32 %v78_v51, 15  ;;  %v136_v41 = vld [vmem:[#allocation4 + $0x38] sm:$0xff] }
  0x20   :  { %v91_v60 = vxor.u32 %v83_v52, %v75_v46  ;;  %v92_v61 = vxor.u32 %v84_v53, %v76_v47  ;;  %v87_v62 = vshrl.u32 %v79_v54, 15  ;;  %v88_v63 = vshrl.u32 %v80_v55, 15 }
  0x21   :  { %v97_v0 = vmul.u32 2221713035, %v89_v56  ;;  %v98_v1 = vmul.u32 2221713035, %v90_v57  ;;  %v93_v2 = vxor.u32 %v85_v58, %v77_v50  ;;  %v94_v3 = vxor.u32 %v86_v59, %v78_v51 }
  0x22   :  { %v99_v4 = vmul.u32 2221713035, %v91_v60  ;;  %v100_v5 = vmul.u32 2221713035, %v92_v61  ;;  %v95_v6 = vxor.u32 %v87_v62, %v79_v54  ;;  %v96_v7 = vxor.u32 %v88_v63, %v80_v55 }
  0x23   :  { %v105_v8 = vshrl.u32 %v97_v0, 16  ;;  %v106_v9 = vshrl.u32 %v98_v1, 16  ;;  %v101_v10 = vmul.u32 2221713035, %v93_v2  ;;  %v102_v11 = vmul.u32 2221713035, %v94_v3 }
  0x24   :  { %v107_v12 = vshrl.u32 %v99_v4, 16  ;;  %v108_v13 = vshrl.u32 %v100_v5, 16  ;;  %v103_v14 = vmul.u32 2221713035, %v95_v6  ;;  %v104_v15 = vmul.u32 2221713035, %v96_v7 }
  0x25   :  { %v113_v16 = vxor.u32 %v105_v8, %v97_v0  ;;  %v114_v18 = vxor.u32 %v106_v9, %v98_v1  ;;  %v109_v20 = vshrl.u32 %v101_v10, 16  ;;  %v110_v21 = vshrl.u32 %v102_v11, 16 }
  0x26   :  { %v115_v22 = vxor.u32 %v107_v12, %v99_v4  ;;  %v116_v24 = vxor.u32 %v108_v13, %v100_v5  ;;  %v111_v26 = vshrl.u32 %v103_v14, 16  ;;  %v112_v27 = vshrl.u32 %v104_v15, 16 }
  0x27   :  { %vm121_vm0 = vcmp.lt.u32.totalorder %v113_v16, 1288490189  ;;  %vm122_vm1 = vcmp.lt.u32.totalorder %v114_v18, 1288490189  ;;  %v117_v28 = vxor.u32 %v109_v20, %v101_v10  ;;  %v118_v30 = vxor.u32 %v110_v21, %v102_v11 }
  0x28   :  { %v137_v32 = vsel %vm121_vm0, 1, %v129_v17  ;;  %v138_v33 = vsel %vm122_vm1, 1, %v130_v19  ;;  %vm123_vm2 = vcmp.lt.u32.totalorder %v115_v22, 1288490189  ;;  %vm124_vm3 = vcmp.lt.u32.totalorder %v116_v24, 1288490189 }
  0x29   :  { %145 = vst [vmem:[#allocation7] sm:$0xff] %v137_v32  ;;  %146 = vst [vmem:[#allocation7 + $0x8] sm:$0xff] %v138_v33  ;;  %v139_v34 = vsel %vm123_vm2, 1, %v131_v23  ;;  %v140_v35 = vsel %vm124_vm3, 1, %v132_v25  ;;  %vm125_vm4 = vcmp.lt.u32.totalorder %v117_v28, 1288490189  ;;  %v119_v38 = vxor.u32 %v111_v26, %v103_v14 }
  0x2a   :  { %vm126_vm5 = vcmp.lt.u32.totalorder %v118_v30, 1288490189  ;;  %147 = vst [vmem:[#allocation7 + $0x10] sm:$0xff] %v139_v34  ;;  %148 = vst [vmem:[#allocation7 + $0x18] sm:$0xff] %v140_v35  ;;  %v141_v36 = vsel %vm125_vm4, 1, %v133_v29  ;;  %v120_v40 = vxor.u32 %v112_v27, %v104_v15 }
  0x2b   :  { %v142_v37 = vsel %vm126_vm5, 1, %v134_v31  ;;  %149 = vst [vmem:[#allocation7 + $0x20] sm:$0xff] %v141_v36  ;;  %vm127_vm6 = vcmp.lt.u32.totalorder %v119_v38, 1288490189 }
  0x2c   :  { %150 = vst [vmem:[#allocation7 + $0x28] sm:$0xff] %v142_v37  ;;  %vm128_vm7 = vcmp.lt.u32.totalorder %v120_v40, 1288490189  ;;  %v143_v42 = vsel %vm127_vm6, 1, %v135_v39 }
  0x2d   :  { %v144_v43 = vsel %vm128_vm7, 1, %v136_v41  ;;  %151 = vst [vmem:[#allocation7 + $0x30] sm:$0xff] %v143_v42 }
  0x2e   :  { %152 = vst [vmem:[#allocation7 + $0x38] sm:$0xff] %v144_v43 }
  0x2f   :  { %201 = shalt.err (!%p198_p9)
}
  0x30   :  { %162 = dma.vmem_to_hbm [thread:$0]  %s160_s1, 1024, %s242_s2, [#allocation6]  }
  0x31   :  { %212 = dma.done.wait [#allocation6], 1024  }
  0x32   :  { %213 = vsyncadd [#allocation6], 4294966272 }
  0x33   :  { %166 = vsyncpa [#allocation5], 1 }
  0x34   :  { %167 = vsyncpa [#allocation6], 1 }

</bundles_post_ra>
